<compile_context>
chip_gen: v7x
topology: tpu7x:2x2x1
jax: 0.10.0
libtpu: 0.0.40
codegen_flags: <defaults>
</compile_context>

<pallas_src>
import jax
import jax.numpy as jnp
from jax.experimental import pallas as pl
from jax.experimental.pallas import tpu as pltpu

INPUT_SIZE = 5
OUTPUT_SIZE = 2
LANE = 128


def _round_up(n, m):
    return ((n + m - 1) // m) * m


def _linear_kernel(w_ref, b_ref, x_ref, o_ref):
    # w_ref : (Out, In)       f32 in SMEM (PyTorch layout, read as scalars)
    # b_ref : (Out,)          f32 in SMEM
    # x_ref : (In,  TBr, 128) f32 in VMEM (lane axis = batch)
    # o_ref : (Out, TBr, 128) f32 in VMEM (lane axis = batch)
    out_dim, in_dim = w_ref.shape
    x = x_ref[...]                        # one lane-dense load of the tile
    for j in range(out_dim):              # Out = 2, statically unrolled
        acc = x[0] * w_ref[j, 0]          # full-vreg VPU FMAs
        for k in range(1, in_dim):        # In = 5, statically unrolled
            acc = acc + x[k] * w_ref[j, k]
        o_ref[j] = acc + b_ref[j]         # direct row store, no concatenate


def linear_forward_fmajor(x3, weight, bias, *, tb=None, tb_max=262144):
    """Feature-major fast path (no host-side layout ops).

    x3:  (In, Bp//128, 128) f32 with Bp % 1024 == 0
         (a free contiguous reshape of a feature-major (In, Bp) activation).
    out: (Out, Bp//128, 128) f32
    """
    In, Bt, lane = x3.shape
    assert lane == LANE
    Out, In_w = weight.shape
    assert In == In_w and bias.shape == (Out,)
    Bp = Bt * LANE

    if tb is None:
        tb = min(tb_max, Bp)
    assert Bp % tb == 0
    tbr = tb // LANE
    assert tbr % 8 == 0 or tbr == Bt       # (8,128) block-shape constraint
    grid = (Bp // tb,)

    bytes_accessed = 4 * Bp * (In + Out) + 4 * (Out * In + Out)
    cost = pl.CostEstimate(flops=2 * In * Out * Bp,
                           transcendentals=0,
                           bytes_accessed=bytes_accessed)

    return pl.pallas_call(
        _linear_kernel,
        out_shape=jax.ShapeDtypeStruct((Out, Bt, LANE), x3.dtype),
        grid_spec=pltpu.PrefetchScalarGridSpec(
            num_scalar_prefetch=0,
            grid=grid,
            in_specs=[
                # Tiny parameters live in SMEM and stay resident across tiles.
                pl.BlockSpec(memory_space=pltpu.MemorySpace.SMEM),   # weight
                pl.BlockSpec(memory_space=pltpu.MemorySpace.SMEM),   # bias
                # Activation tile: lane-dense, full-vreg, pipelined over batch.
                pl.BlockSpec((In, tbr, LANE), lambda i: (0, i, 0)),
            ],
            out_specs=pl.BlockSpec((Out, tbr, LANE), lambda i: (0, i, 0)),
        ),
        compiler_params=pltpu.CompilerParams(
            dimension_semantics=("parallel",),        # v7x dual-TC split
            vmem_limit_bytes=48 * 1024 * 1024),
        cost_estimate=cost,
    )(weight, bias, x3)


def _choose_tb(B, tb_max):
    # Tile of at least 1024 batch rows (so TB/128 is a multiple of 8), as big
    # as possible up to tb_max, but keeping >= 4 grid steps for large batches
    # so the 'parallel' axis still splits across TCs and double-buffers.
    TB = min(tb_max, _round_up(B, 1024))
    if B > 4 * 1024:
        TB = min(TB, _round_up((B + 3) // 4, 1024))
    return max(TB, 1024)


def linear_forward(x, weight, bias, *, tb_max=262144):
    """PyTorch-compatible wrapper: x (B, In) f32 -> (B, Out) f32."""
    B, In = x.shape
    Out = weight.shape[0]

    TB = _choose_tb(B, tb_max)
    Bp = _round_up(B, TB)

    # Single fused layout pass (pad + transpose + free contiguous reshape).
    # TODO(synk): callers that keep activations feature-major end-to-end should
    # call linear_forward_fmajor directly and skip this HBM round trip.
    x3 = jnp.pad(x, ((0, Bp - B), (0, 0))).T.reshape(In, Bp // LANE, LANE)

    o3 = linear_forward_fmajor(x3, weight, bias, tb=TB, tb_max=tb_max)

    # Drop batch padding, restore (B, Out) PyTorch orientation.
    return o3.reshape(Out, Bp)[:, :B].T


if __name__ == "__main__":
    key = jax.random.PRNGKey(0)
    k_x, k_w, k_b = jax.random.split(key, 3)

    batch = 8
    # Deterministic parameter init mimicking nn.Linear's uniform(-1/sqrt(in), 1/sqrt(in))
    bound = 1.0 / (INPUT_SIZE ** 0.5)
    weight = jax.random.uniform(k_w, (OUTPUT_SIZE, INPUT_SIZE),
                                minval=-bound, maxval=bound, dtype=jnp.float32)
    bias = jax.random.uniform(k_b, (OUTPUT_SIZE,),
                              minval=-bound, maxval=bound, dtype=jnp.float32)

    x = jax.random.normal(k_x, (batch, INPUT_SIZE), dtype=jnp.float32)

    out = linear_forward(x, weight, bias)
    out = jax.block_until_ready(out)

    # Reference check (mirrors nn.Linear forward)
    ref = x @ weight.T + bias
    assert out.shape == (batch, OUTPUT_SIZE)
    assert jnp.allclose(out, ref, atol=1e-5, rtol=1e-5)
    # Mirror of the module's print
    print("\tIn Model: input size", tuple(x.shape), "output size", tuple(out.shape))
    print("KERNEL_OK")
</pallas_src>

<mosaic_0001>
module attributes {stable_mosaic.version = 11 : i64} {
  func.func @_linear_kernel(%arg0: i32, %arg1: memref<2x5xf32, #tpu.memory_space<smem>>, %arg2: memref<2xf32, #tpu.memory_space<smem>>, %arg3: memref<5x8x128xf32, #tpu.memory_space<vmem>>, %arg4: memref<2x8x128xf32, #tpu.memory_space<vmem>>) attributes {dimension_semantics = [#tpu.dimension_semantics<parallel>], iteration_bounds = array<i64: 1>, scalar_prefetch = 0 : i64, scratch_operands = 0 : i64, tpu.core_type = #tpu.core_type<tc>, window_params = [{transform_indices = @transform_0, window_bounds = array<i64: 2, 5>}, {transform_indices = @transform_1, window_bounds = array<i64: 2>}, {transform_indices = @transform_2, window_bounds = array<i64: 5, 8, 128>}, {transform_indices = @transform_3, window_bounds = array<i64: 2, 8, 128>}]} {
    %c0 = arith.constant 0 : index
    %c0_0 = arith.constant 0 : index
    %c0_1 = arith.constant 0 : index
    %0 = vector.load %arg3[%c0, %c0_0, %c0_1] : memref<5x8x128xf32, #tpu.memory_space<vmem>>, vector<5x8x128xf32>
    %1 = vector.extract_strided_slice %0 {offsets = [0, 0, 0], sizes = [1, 8, 128], strides = [1, 1, 1]} : vector<5x8x128xf32> to vector<1x8x128xf32>
    %2 = vector.shape_cast %1 : vector<1x8x128xf32> to vector<8x128xf32>
    %c0_2 = arith.constant 0 : index
    %c0_3 = arith.constant 0 : index
    %3 = memref.load %arg1[%c0_2, %c0_3] : memref<2x5xf32, #tpu.memory_space<smem>>
    %4 = vector.broadcast %3 : f32 to vector<8x128xf32>
    %5 = arith.mulf %2, %4 : vector<8x128xf32>
    %6 = vector.extract_strided_slice %0 {offsets = [1, 0, 0], sizes = [1, 8, 128], strides = [1, 1, 1]} : vector<5x8x128xf32> to vector<1x8x128xf32>
    %7 = vector.shape_cast %6 : vector<1x8x128xf32> to vector<8x128xf32>
    %c0_4 = arith.constant 0 : index
    %c1 = arith.constant 1 : index
    %8 = memref.load %arg1[%c0_4, %c1] : memref<2x5xf32, #tpu.memory_space<smem>>
    %9 = vector.broadcast %8 : f32 to vector<8x128xf32>
    %10 = arith.mulf %7, %9 : vector<8x128xf32>
    %11 = arith.addf %5, %10 : vector<8x128xf32>
    %12 = vector.extract_strided_slice %0 {offsets = [2, 0, 0], sizes = [1, 8, 128], strides = [1, 1, 1]} : vector<5x8x128xf32> to vector<1x8x128xf32>
    %13 = vector.shape_cast %12 : vector<1x8x128xf32> to vector<8x128xf32>
    %c0_5 = arith.constant 0 : index
    %c2 = arith.constant 2 : index
    %14 = memref.load %arg1[%c0_5, %c2] : memref<2x5xf32, #tpu.memory_space<smem>>
    %15 = vector.broadcast %14 : f32 to vector<8x128xf32>
    %16 = arith.mulf %13, %15 : vector<8x128xf32>
    %17 = arith.addf %11, %16 : vector<8x128xf32>
    %18 = vector.extract_strided_slice %0 {offsets = [3, 0, 0], sizes = [1, 8, 128], strides = [1, 1, 1]} : vector<5x8x128xf32> to vector<1x8x128xf32>
    %19 = vector.shape_cast %18 : vector<1x8x128xf32> to vector<8x128xf32>
    %c0_6 = arith.constant 0 : index
    %c3 = arith.constant 3 : index
    %20 = memref.load %arg1[%c0_6, %c3] : memref<2x5xf32, #tpu.memory_space<smem>>
    %21 = vector.broadcast %20 : f32 to vector<8x128xf32>
    %22 = arith.mulf %19, %21 : vector<8x128xf32>
    %23 = arith.addf %17, %22 : vector<8x128xf32>
    %24 = vector.extract_strided_slice %0 {offsets = [4, 0, 0], sizes = [1, 8, 128], strides = [1, 1, 1]} : vector<5x8x128xf32> to vector<1x8x128xf32>
    %25 = vector.shape_cast %24 : vector<1x8x128xf32> to vector<8x128xf32>
    %c0_7 = arith.constant 0 : index
    %c4 = arith.constant 4 : index
    %26 = memref.load %arg1[%c0_7, %c4] : memref<2x5xf32, #tpu.memory_space<smem>>
    %27 = vector.broadcast %26 : f32 to vector<8x128xf32>
    %28 = arith.mulf %25, %27 : vector<8x128xf32>
    %29 = arith.addf %23, %28 : vector<8x128xf32>
    %c0_8 = arith.constant 0 : index
    %30 = memref.load %arg2[%c0_8] : memref<2xf32, #tpu.memory_space<smem>>
    %31 = vector.broadcast %30 : f32 to vector<8x128xf32>
    %32 = arith.addf %29, %31 : vector<8x128xf32>
    %c0_9 = arith.constant 0 : index
    %c0_10 = arith.constant 0 : index
    %c0_11 = arith.constant 0 : index
    %33 = vector.load %arg4[%c0_9, %c0_10, %c0_11] : memref<2x8x128xf32, #tpu.memory_space<vmem>>, vector<1x8x128xf32>
    %34 = vector.shape_cast %33 : vector<1x8x128xf32> to vector<8x128xf32>
    %35 = vector.shape_cast %32 : vector<8x128xf32> to vector<1x8x128xf32>
    tpu.vector_store %arg4[%c0_9, %c0_10, %c0_11], %35 {strides = array<i32>} : memref<2x8x128xf32, #tpu.memory_space<vmem>>, vector<1x8x128xf32>,
    %36 = vector.extract_strided_slice %0 {offsets = [0, 0, 0], sizes = [1, 8, 128], strides = [1, 1, 1]} : vector<5x8x128xf32> to vector<1x8x128xf32>
    %37 = vector.shape_cast %36 : vector<1x8x128xf32> to vector<8x128xf32>
    %c1_12 = arith.constant 1 : index
    %c0_13 = arith.constant 0 : index
    %38 = memref.load %arg1[%c1_12, %c0_13] : memref<2x5xf32, #tpu.memory_space<smem>>
    %39 = vector.broadcast %38 : f32 to vector<8x128xf32>
    %40 = arith.mulf %37, %39 : vector<8x128xf32>
    %41 = vector.extract_strided_slice %0 {offsets = [1, 0, 0], sizes = [1, 8, 128], strides = [1, 1, 1]} : vector<5x8x128xf32> to vector<1x8x128xf32>
    %42 = vector.shape_cast %41 : vector<1x8x128xf32> to vector<8x128xf32>
    %c1_14 = arith.constant 1 : index
    %c1_15 = arith.constant 1 : index
    %43 = memref.load %arg1[%c1_14, %c1_15] : memref<2x5xf32, #tpu.memory_space<smem>>
    %44 = vector.broadcast %43 : f32 to vector<8x128xf32>
    %45 = arith.mulf %42, %44 : vector<8x128xf32>
    %46 = arith.addf %40, %45 : vector<8x128xf32>
    %47 = vector.extract_strided_slice %0 {offsets = [2, 0, 0], sizes = [1, 8, 128], strides = [1, 1, 1]} : vector<5x8x128xf32> to vector<1x8x128xf32>
    %48 = vector.shape_cast %47 : vector<1x8x128xf32> to vector<8x128xf32>
    %c1_16 = arith.constant 1 : index
    %c2_17 = arith.constant 2 : index
    %49 = memref.load %arg1[%c1_16, %c2_17] : memref<2x5xf32, #tpu.memory_space<smem>>
    %50 = vector.broadcast %49 : f32 to vector<8x128xf32>
    %51 = arith.mulf %48, %50 : vector<8x128xf32>
    %52 = arith.addf %46, %51 : vector<8x128xf32>
    %53 = vector.extract_strided_slice %0 {offsets = [3, 0, 0], sizes = [1, 8, 128], strides = [1, 1, 1]} : vector<5x8x128xf32> to vector<1x8x128xf32>
    %54 = vector.shape_cast %53 : vector<1x8x128xf32> to vector<8x128xf32>
    %c1_18 = arith.constant 1 : index
    %c3_19 = arith.constant 3 : index
    %55 = memref.load %arg1[%c1_18, %c3_19] : memref<2x5xf32, #tpu.memory_space<smem>>
    %56 = vector.broadcast %55 : f32 to vector<8x128xf32>
    %57 = arith.mulf %54, %56 : vector<8x128xf32>
    %58 = arith.addf %52, %57 : vector<8x128xf32>
    %59 = vector.extract_strided_slice %0 {offsets = [4, 0, 0], sizes = [1, 8, 128], strides = [1, 1, 1]} : vector<5x8x128xf32> to vector<1x8x128xf32>
    %60 = vector.shape_cast %59 : vector<1x8x128xf32> to vector<8x128xf32>
    %c1_20 = arith.constant 1 : index
    %c4_21 = arith.constant 4 : index
    %61 = memref.load %arg1[%c1_20, %c4_21] : memref<2x5xf32, #tpu.memory_space<smem>>
    %62 = vector.broadcast %61 : f32 to vector<8x128xf32>
    %63 = arith.mulf %60, %62 : vector<8x128xf32>
    %64 = arith.addf %58, %63 : vector<8x128xf32>
    %c1_22 = arith.constant 1 : index
    %65 = memref.load %arg2[%c1_22] : memref<2xf32, #tpu.memory_space<smem>>
    %66 = vector.broadcast %65 : f32 to vector<8x128xf32>
    %67 = arith.addf %64, %66 : vector<8x128xf32>
    %c1_23 = arith.constant 1 : index
    %c0_24 = arith.constant 0 : index
    %c0_25 = arith.constant 0 : index
    %68 = vector.load %arg4[%c1_23, %c0_24, %c0_25] : memref<2x8x128xf32, #tpu.memory_space<vmem>>, vector<1x8x128xf32>
    %69 = vector.shape_cast %68 : vector<1x8x128xf32> to vector<8x128xf32>
    %70 = vector.shape_cast %67 : vector<8x128xf32> to vector<1x8x128xf32>
    tpu.vector_store %arg4[%c1_23, %c0_24, %c0_25], %70 {strides = array<i32>} : memref<2x8x128xf32, #tpu.memory_space<vmem>>, vector<1x8x128xf32>,
    return
  }
  func.func @transform_0(%arg0: i32) -> (i32, i32) {
    %c0_i32 = arith.constant 0 : i32
    %c0_i32_0 = arith.constant 0 : i32
    %c0_i32_1 = arith.constant 0 : i32
    return %c0_i32, %c0_i32_0 : i32, i32
  }
  func.func @transform_1(%arg0: i32) -> i32 {
    %c0_i32 = arith.constant 0 : i32
    %c0_i32_0 = arith.constant 0 : i32
    return %c0_i32 : i32
  }
  func.func @transform_2(%arg0: i32) -> (i32, i32, i32) {
    %c0_i32 = arith.constant 0 : i32
    %c0_i32_0 = arith.constant 0 : i32
    %c0_i32_1 = arith.constant 0 : i32
    return %c0_i32, %arg0, %c0_i32_0 : i32, i32, i32
  }
  func.func @transform_3(%arg0: i32) -> (i32, i32, i32) {
    %c0_i32 = arith.constant 0 : i32
    %c0_i32_0 = arith.constant 0 : i32
    %c0_i32_1 = arith.constant 0 : i32
    return %c0_i32, %arg0, %c0_i32_0 : i32, i32, i32
  }
}

</mosaic_0001>

<bundles_post_ra>
// kernel: tpu_custom_call.1
= control target key start
LH: loop header
LB: loop body
LE: loop exit
PB: predicated region body
PF: predicated region fallthrough
CT: control target
= control target key end

     0   :  { %8 = vsyncpa [#allocation5], 0  ;;  %s287_s0 = inlined_call_operand.hbm [shape: f32[2,5], index: 0, kind: input, shape index: {}]   ;;  %s288_s1 = inlined_call_operand.vmem [shape: f32[2], index: 1, kind: input, shape index: {}]   ;;  %s289_s2 = inlined_call_operand.hbm [shape: f32[5,8,128], index: 2, kind: input, shape index: {}]   ;;  %s290_s3 = inlined_call_operand.hbm [shape: f32[2,8,128], index: 3, kind: output, shape index: {}]  }
   0x1   :  { %9 = vsyncpa [#allocation6], 0 }
   0x2   :  { %10 = vsyncpa [#allocation3], 0 }
   0x3   :  { %11 = vsyncpa [#allocation4], 0  ;;  %s26_s14 = sshll.u32 %s288_s1, 4  ;;  %s139_s17 = scalar_lea.hbm %s287_s0, 32  ;;  %s27_s14 = int_to_ptr.vmem [resolvable:$true] %s26_s14 }
   0x4   :  { %p140_p0 = scmp.ne.s32.totalorder %s287_s0, %s139_s17  ;;  %p143_p1 = scmp.lt.u32.totalorder %s139_s17, %s287_s0 }
   0x6   :  { %p145_p2 = pnand %p143_p1, %p140_p0 }
   0x8   :  { %148 = shalt.err (!%p145_p2)
}
   0x9   :  { %s213_s22 = smov [#allocation2]   ;;  %s149_s1 = scalar_lea.vmem %s27_s14, 16 }
   0xa   :  { %19 = dma.hbm_to_smem %s287_s0, 32, %s213_s22, [#allocation5]  }
   0xb   :  { %p150_p3 = scmp.ne.s32.totalorder %s27_s14, %s149_s1  ;;  %p154_p4 = scmp.lt.s32.totalorder %s27_s14, %s27_s14 }
   0xc   :  { %p155_p5 = scmp.lt.s32.totalorder %s149_s1, %s149_s1 }
   0xe   :  { %p156_p6 = por %p155_p5, %p154_p4 }
  0x10   :  { %p157_p7 = pnand %p156_p6, %p150_p3 }
  0x12   :  { %160 = shalt.err (!%p157_p7)
}
  0x13   :  { %s214_s25 = smov [#allocation7]   ;;  %s215_s26 = smov [#allocation8]  }
  0x14   :  { %29 = dma.vmem_to_smem %s27_s14, 16, %s214_s25, [#allocation6]  }
  0x15   :  { %s35_s27 = sshll.u32 %s215_s26, 4  ;;  %s161_s30 = scalar_lea.hbm %s289_s2, 640  ;;  %s36_s27 = int_to_ptr.vmem [resolvable:$true] %s35_s27 }
  0x16   :  { %p162_p8 = scmp.ne.s32.totalorder %s289_s2, %s161_s30  ;;  %p165_p9 = scmp.lt.u32.totalorder %s161_s30, %s289_s2 }
  0x18   :  { %p167_p10 = pnand %p165_p9, %p162_p8 }
  0x1a   :  { %170 = shalt.err (!%p167_p10)
}
  0x1b   :  { %s171_s7 = scalar_lea.vmem %s36_s27, 640  ;;  %p176_p12 = scmp.lt.s32.totalorder %s36_s27, %s36_s27 }
  0x1c   :  { %p172_p11 = scmp.ne.s32.totalorder %s36_s27, %s171_s7  ;;  %p177_p13 = scmp.lt.s32.totalorder %s171_s7, %s171_s7 }
  0x1e   :  { %p178_p0 = por %p177_p13, %p176_p12 }
  0x20   :  { %p179_p1 = pnand %p178_p0, %p172_p11 }
  0x22   :  { %182 = shalt.err (!%p179_p1)
}
  0x23   :  { %s216_s8 = smov 128   ;;  %s217_s9 = smov 8  }
  0x24   :  { %41 = dma.hbm_to_vmem [thread:$0]  %s289_s2, 640, %s36_s27, [#allocation3], %s216_s8, %s216_s8, %s217_s9  }
  0x25   :  { %205 = dma.done.wait [#allocation5], 32  }
  0x26   :  { %206 = vsyncadd [#allocation5], 4294967264 }
  0x27   :  { %207 = dma.done.wait [#allocation6], 16  }
  0x28   :  { %208 = vsyncadd [#allocation6], 4294967280 }
  0x29   :  { %209 = dma.done.wait [#allocation3], 640  }
  0x2a   :  { %210 = vsyncadd [#allocation3], 4294966656 }
  0x2b   :  { %51 = sfence }
  0x2c   :  { %s57_s12 = sld [smem:[#allocation2]]  ;;  %s123_s13 = sld [smem:[#allocation2 + $0x1]]  ;;  %v52_v0 = vld [vmem:[#allocation8] sm:$0xff]  ;;  %v53_v1 = vld [vmem:[#allocation8 + $0x8] sm:$0xff]  ;;  %v54_v2 = vld [vmem:[#allocation8 + $0x10] sm:$0xff] }
  0x2d   :  { %s124_s14 = sld [smem:[#allocation2 + $0x2]]  ;;  %s125_s15 = sld [smem:[#allocation2 + $0x3]]  ;;  %v55_v3 = vld [vmem:[#allocation8 + $0x18] sm:$0xff]  ;;  %v56_v11 = vld [vmem:[#allocation8 + $0x20] sm:$0xff] }
  0x2e   :  { %s269_s16 = sld [smem:[#allocation2 + $0x4]]  ;;  %s127_s17 = sld [smem:[#allocation2 + $0x80]] }
  0x2f   :  { %s128_s18 = sld [smem:[#allocation2 + $0x81]]  ;;  %s129_s19 = sld [smem:[#allocation2 + $0x82]] }
  0x30   :  { %s130_s2 = sld [smem:[#allocation2 + $0x83]]  ;;  %s131_s20 = sld [smem:[#allocation2 + $0x84]] }
  0x31   :  { %s76_s21 = sld [smem:[#allocation7]]  ;;  %s132_s22 = sld [smem:[#allocation7 + $0x1]] }
  0x32   :  { %v58_v4 = vstv %s57_s12  ;;  %v61_v6 = vstv %s123_s13  ;;  %s218_s23 = smov [#allocation9]  }
  0x33   :  { %v59_v5 = vmul.f32 %v58_v4, %v52_v0  ;;  %v65_v7 = vstv %s124_s14  ;;  %v62_v8 = vmul.f32 %v61_v6, %v53_v1  ;;  %v69_v10 = vstv %s125_s15  ;;  %s109_s24 = sshll.u32 %s218_s23, 4  ;;  %s110_s24 = int_to_ptr.vmem [resolvable:$true] %s109_s24 }
  0x34   :  { %v66_v9 = vmul.f32 %v65_v7, %v54_v2  ;;  %v70_v12 = vmul.f32 %v69_v10, %v55_v3  ;;  %v73_v13 = vstv %s269_s16  ;;  %v81_v14 = vstv %s127_s17  ;;  %s183_s1 = scalar_lea.vmem %s110_s24, 256  ;;  %p188_p3 = scmp.lt.s32.totalorder %s110_s24, %s110_s24 }
  0x35   :  { %v63_v15 = vadd.f32 %v62_v8, %v59_v5  ;;  %v82_v16 = vmul.f32 %v81_v14, %v52_v0  ;;  %v84_v17 = vstv %s128_s18  ;;  %v88_v18 = vstv %s129_s19  ;;  %p184_p2 = scmp.ne.s32.totalorder %s110_s24, %s183_s1  ;;  %p189_p4 = scmp.lt.s32.totalorder %s183_s1, %s183_s1 }
  0x36   :  { %v85_v19 = vmul.f32 %v84_v17, %v53_v1  ;;  %v89_v20 = vmul.f32 %v88_v18, %v54_v2  ;;  %v92_v21 = vstv %s130_s2  ;;  %v74_v23 = vmul.f32 %v73_v13, %v56_v11 }
  0x37   :  { %v67_v22 = vadd.f32 %v66_v9, %v63_v15  ;;  %v96_v24 = vstv %s131_s20  ;;  %v93_v26 = vmul.f32 %v92_v21, %v55_v3  ;;  %v77_v28 = vstv %s76_s21  ;;  %p190_p5 = por %p189_p4, %p188_p3 }
  0x38   :  { %v86_v25 = vadd.f32 %v85_v19, %v82_v16  ;;  %v97_v30 = vmul.f32 %v96_v24, %v56_v11  ;;  %v100_v34 = vstv %s132_s22 }
  0x39   :  { %v71_v27 = vadd.f32 %v70_v12, %v67_v22  ;;  %p191_p6 = pnand %p190_p5, %p184_p2 }
  0x3a   :  { %v90_v29 = vadd.f32 %v89_v20, %v86_v25 }
  0x3b   :  { %v75_v31 = vadd.f32 %v74_v23, %v71_v27 }
  0x3c   :  { %v94_v32 = vadd.f32 %v93_v26, %v90_v29 }
  0x3d   :  { %v78_v33 = vadd.f32 %v77_v28, %v75_v31 }
  0x3e   :  { %v98_v35 = vadd.f32 %v97_v30, %v94_v32 }
  0x3f   :  { %79 = vst [vmem:[#allocation9] sm:$0xff] %v78_v33 }
  0x40   :  { %v101_v36 = vadd.f32 %v100_v34, %v98_v35 }
  0x42   :  { %103 = vst [vmem:[#allocation9 + $0x8] sm:$0xff] %v101_v36 }
  0x43   :  { %194 = shalt.err (!%p191_p6)
}
  0x44   :  { %s195_s27 = scalar_lea.hbm %s290_s3, 256 }
  0x45   :  { %p196_p7 = scmp.ne.s32.totalorder %s290_s3, %s195_s27  ;;  %p199_p8 = scmp.lt.u32.totalorder %s195_s27, %s290_s3 }
  0x47   :  { %p201_p9 = pnand %p199_p8, %p196_p7 }
  0x49   :  { %204 = shalt.err (!%p201_p9)
}
  0x4a   :  { %115 = dma.vmem_to_hbm [thread:$0]  %s110_s24, 256, %s290_s3, [#allocation4], %s216_s8, %s216_s8, %s217_s9  }
  0x4b   :  { %211 = dma.done.wait [#allocation4], 256  }
  0x4c   :  { %212 = vsyncadd [#allocation4], 4294967040 }
  0x4d   :  { %119 = vsyncpa [#allocation3], 1 }
  0x4e   :  { %120 = vsyncpa [#allocation4], 1 }
  0x4f   :  { %121 = vsyncpa [#allocation5], 1 }
  0x50   :  { %122 = vsyncpa [#allocation6], 1 }

</bundles_post_ra>
